<compile_context>
chip_gen: v6e
topology: v6e:2x2x1
jax: 0.10.0
libtpu: 0.0.40
codegen_flags: <defaults>
</compile_context>

<pallas_src>
import jax
import jax.numpy as jnp
from jax.experimental import pallas as pl
from jax.experimental.pallas import tpu as pltpu


def _round_up(x: int, m: int) -> int:
    return (x + m - 1) // m * m


def _make_kernel(compute_dtype):
    """Per-tile kernel.

    Refs:
      tbl_ref : [E, V]     transposed embedding table (constant, VMEM resident)
      idx_ref : [1, 1, T]  int32 vertex indices for this (batch, spatial) tile
      mask_ref: [1, 1, T]  mask values for this tile
      out_ref : [1, E, T]  masked, gathered embeddings in NCHW-flat layout
    """

    def kernel(tbl_ref, idx_ref, mask_ref, out_ref):
        t = out_ref.shape[2]
        v = tbl_ref.shape[1]

        vid = jax.lax.broadcasted_iota(jnp.int32, (v, t), 0)       # row index = v
        idx_row = idx_ref[0]                                       # [1, T] int32
        m_row = mask_ref[0].astype(compute_dtype)                  # [1, T]

        # Masked one-hot: onehot[v, t] = mask[t] if idx[t] == v else 0
        # (single compare + select on the VPU).
        onehot = jnp.where(vid == idx_row, m_row, 0.0)             # [V, T]

        # Single MXU pass: [E, V] @ [V, T] -> [E, T], already in NCHW layout.
        out = jnp.dot(tbl_ref[...], onehot,
                      preferred_element_type=jnp.float32)
        out_ref[...] = out[None].astype(out_ref.dtype)

    return kernel


def _choose_tile_hw(hw: int, n: int, per_lane_bytes: int,
                    target: int = 2048, vmem_budget: int = 24 << 20) -> int:
    """Pick the spatial tile width (lane dim of every block)."""
    max_by_vmem = max(128, (vmem_budget // max(per_lane_bytes, 1)) // 128 * 128)
    limit = min(target, max_by_vmem)
    if hw % 128 != 0 or hw <= 128:
        # Non-128-aligned or tiny spatial extent: one full-width block per batch
        # (block == full array dim, so it is always legal; stores may be masked).
        return hw
    # Largest multiple of 128 that divides hw and fits the limit.
    best = 128
    t = 128
    while t <= min(hw, limit):
        if hw % t == 0:
            best = t
        t += 128
    # Prefer >= 4 total grid steps (>= 2 per TensorCore on v7x) when possible.
    while best > 128 and n * (hw // best) < 4:
        cand = best - 128
        while cand >= 128 and hw % cand != 0:
            cand -= 128
        if cand < 128:
            break
        best = cand
    return best


def create_embedding(embed_map: jax.Array,
                     vertices: jax.Array,
                     e_mask: jax.Array) -> jax.Array:
    """JAX wrapper mirroring CreateEmbedding.forward.

    embed_map: [V, E]        float
    vertices : [N, 1, H, W]  integer indices into embed_map (must be in [0, V))
    e_mask   : [N, 1, H, W]  mask, broadcast over the E channels
    returns  : [N, E, H, W]
    """
    V, E = embed_map.shape
    N, one, H, W = vertices.shape
    assert one == 1
    assert e_mask.shape == (N, 1, H, W)
    HW = H * W

    # Dtypes: bf16 MXU path only when the table is already bf16; otherwise f32
    # math so f32 inputs match the reference bit-for-bit within 1e-5.
    compute_dtype = jnp.bfloat16 if embed_map.dtype == jnp.bfloat16 else jnp.float32
    out_dtype = jnp.result_type(embed_map.dtype, e_mask.dtype)

    # Inputs in the layouts the kernel wants (cheap host-side reshapes).
    tbl_t = embed_map.astype(compute_dtype).T                     # [E, V], tiny
    idx_p = vertices.reshape(N, 1, HW).astype(jnp.int32)          # [N, 1, HW]
    mask_p = e_mask.reshape(N, 1, HW)                             # native dtype

    # Padded per-lane VMEM cost (bytes per spatial-tile element) used both for
    # tile selection and for the explicit vmem limit.
    v_pad = _round_up(V, 8)
    e_pad = _round_up(E, 8)
    obytes = jnp.dtype(out_dtype).itemsize
    per_lane_bytes = (2 * e_pad * obytes            # double-buffered output block
                      + 2 * 8 * (4 + 4)             # idx + mask blocks (sublane-padded)
                      + 2 * v_pad * 4)              # one-hot temp + iota (32-bit)

    tile_hw = _choose_tile_hw(HW, N, per_lane_bytes)
    grid = (N, pl.cdiv(HW, tile_hw))

    # Explicit, padding-aware VMEM budget (no arbitrary 32 MiB clamp; capped so
    # it stays safe on v7x's 64 MiB physical VMEM).
    lane_t = _round_up(tile_hw, 128)
    cbytes = jnp.dtype(compute_dtype).itemsize
    table_blk = e_pad * _round_up(V, 128) * cbytes
    idx_blk = 8 * lane_t * 4
    mask_blk = 8 * lane_t * 4
    out_blk = e_pad * lane_t * obytes
    onehot_tmp = v_pad * lane_t * 4
    vmem_need = (2 * table_blk + 2 * (idx_blk + mask_blk + out_blk)
                 + 2 * onehot_tmp + (2 << 20))
    vmem_limit = int(min(max(vmem_need, 8 << 20), 48 << 20))
    # TODO(synk): for very large V (v_pad * tile * 4 beyond a few MiB), keep the
    # table in HBM (memory_space=pl.ANY) and tile V as an 'arbitrary' reduction
    # grid axis with an f32 accumulator instead of materializing a [V, T] one-hot.

    out_nchw = pl.pallas_call(
        _make_kernel(compute_dtype),
        out_shape=jax.ShapeDtypeStruct((N, E, HW), out_dtype),
        grid_spec=pltpu.PrefetchScalarGridSpec(
            num_scalar_prefetch=0,
            grid=grid,
            in_specs=[
                # Small transposed table every step; constant index_map -> one DMA.
                pl.BlockSpec((E, V), lambda n, t: (0, 0)),
                # Per-(batch, spatial-tile) index / mask slabs.
                pl.BlockSpec((1, 1, tile_hw), lambda n, t: (n, 0, t)),
                pl.BlockSpec((1, 1, tile_hw), lambda n, t: (n, 0, t)),
            ],
            out_specs=pl.BlockSpec((1, E, tile_hw), lambda n, t: (n, 0, t)),
        ),
        compiler_params=pltpu.CompilerParams(
            dimension_semantics=("parallel", "parallel"),
            vmem_limit_bytes=vmem_limit,
        ),
    )(tbl_t, idx_p, mask_p)

    # [N, E, HW] row-major == [N, E, H, W] row-major -> free reshape, no transpose.
    return out_nchw.reshape(N, E, H, W)


if __name__ == "__main__":
    key = jax.random.PRNGKey(0)
    k_emb, k_idx, k_mask = jax.random.split(key, 3)

    N, H, W = 2, 16, 16          # batch, spatial
    V, E = 32, 32                # number of vertices, embedding dim

    embed_map = jax.random.normal(k_emb, (V, E), dtype=jnp.float32)
    vertices = jax.random.randint(k_idx, (N, 1, H, W), 0, V, dtype=jnp.int32)
    e_mask = (jax.random.uniform(k_mask, (N, 1, H, W)) > 0.5).astype(jnp.float32)

    out = create_embedding(embed_map, vertices, e_mask)
    out = jax.block_until_ready(out)

    # Pure-JAX reference of the PyTorch forward.
    ref = embed_map[vertices]                 # [N,1,H,W,E]
    ref = jnp.squeeze(ref, axis=1)            # [N,H,W,E]
    ref = jnp.transpose(ref, (0, 3, 1, 2))    # [N,E,H,W]
    ref = ref * e_mask                        # broadcast over E

    assert out.shape == (N, E, H, W)
    assert jnp.allclose(out, ref, atol=1e-5, rtol=1e-5)
    print("KERNEL_OK")
</pallas_src>

<mosaic_0001>
module attributes {stable_mosaic.version = 11 : i64} {
  func.func @kernel(%arg0: i32, %arg1: i32, %arg2: memref<32x32xf32, #tpu.memory_space<vmem>>, %arg3: memref<1x1x128xi32, #tpu.memory_space<vmem>>, %arg4: memref<1x1x128xf32, #tpu.memory_space<vmem>>, %arg5: memref<1x32x128xf32, #tpu.memory_space<vmem>>) attributes {dimension_semantics = [#tpu.dimension_semantics<parallel>, #tpu.dimension_semantics<parallel>], iteration_bounds = array<i64: 2, 2>, scalar_prefetch = 0 : i64, scratch_operands = 0 : i64, tpu.core_type = #tpu.core_type<tc>, window_params = [{pipeline_mode = #tpu.pipeline_mode<synchronous>, transform_indices = @transform_0, window_bounds = array<i64: 32, 32>}, {transform_indices = @transform_1, window_bounds = array<i64: 1, 1, 128>}, {transform_indices = @transform_2, window_bounds = array<i64: 1, 1, 128>}, {transform_indices = @transform_3, window_bounds = array<i64: 1, 32, 128>}]} {
    %0 = tpu.iota {dimensions = array<i32: 0>} : vector<32x128xi32>
    %c0 = arith.constant 0 : index
    %c0_0 = arith.constant 0 : index
    %c0_1 = arith.constant 0 : index
    %1 = vector.load %arg3[%c0, %c0_0, %c0_1] : memref<1x1x128xi32, #tpu.memory_space<vmem>>, vector<1x1x128xi32>
    %2 = vector.shape_cast %1 : vector<1x1x128xi32> to vector<1x128xi32>
    %c0_2 = arith.constant 0 : index
    %c0_3 = arith.constant 0 : index
    %c0_4 = arith.constant 0 : index
    %3 = vector.load %arg4[%c0_2, %c0_3, %c0_4] : memref<1x1x128xf32, #tpu.memory_space<vmem>>, vector<1x1x128xf32>
    %4 = vector.shape_cast %3 : vector<1x1x128xf32> to vector<1x128xf32>
    %5 = vector.broadcast %2 : vector<1x128xi32> to vector<32x128xi32>
    %6 = arith.cmpi eq, %0, %5 : vector<32x128xi32>
    %cst = arith.constant 0.000000e+00 : f32
    %7 = vector.shape_cast %4 : vector<1x128xf32> to vector<1x128xf32>
    %8 = vector.broadcast %7 : vector<1x128xf32> to vector<32x128xf32>
    %9 = vector.broadcast %cst : f32 to vector<32x128xf32>
    %10 = arith.select %6, %8, %9 : vector<32x128xi1>, vector<32x128xf32>
    %c0_5 = arith.constant 0 : index
    %c0_6 = arith.constant 0 : index
    %11 = vector.load %arg2[%c0_5, %c0_6] : memref<32x32xf32, #tpu.memory_space<vmem>>, vector<32x32xf32>
    %cst_7 = arith.constant dense<0.000000e+00> : vector<32x128xf32>
    %12 = tpu.matmul %11, %10, %cst_7 {dimension_numbers = #tpu.dot_dimension_numbers<[1], [0], [0], [1], [0, 0, 1, 1], [], []>} : vector<32x32xf32>, vector<32x128xf32>, vector<32x128xf32> -> vector<32x128xf32>
    %13 = vector.shape_cast %12 : vector<32x128xf32> to vector<1x32x128xf32>
    %c0_8 = arith.constant 0 : index
    %c0_9 = arith.constant 0 : index
    %c0_10 = arith.constant 0 : index
    %14 = vector.load %arg5[%c0_8, %c0_9, %c0_10] : memref<1x32x128xf32, #tpu.memory_space<vmem>>, vector<1x32x128xf32>
    tpu.vector_store %arg5[%c0_8, %c0_9, %c0_10], %13 {strides = array<i32>} : memref<1x32x128xf32, #tpu.memory_space<vmem>>, vector<1x32x128xf32>,
    return
  }
  func.func @transform_0(%arg0: i32, %arg1: i32) -> (i32, i32) {
    %c0_i32 = arith.constant 0 : i32
    %c0_i32_0 = arith.constant 0 : i32
    %c0_i32_1 = arith.constant 0 : i32
    return %c0_i32, %c0_i32_0 : i32, i32
  }
  func.func @transform_1(%arg0: i32, %arg1: i32) -> (i32, i32, i32) {
    %c0_i32 = arith.constant 0 : i32
    %c0_i32_0 = arith.constant 0 : i32
    return %arg0, %c0_i32, %arg1 : i32, i32, i32
  }
  func.func @transform_2(%arg0: i32, %arg1: i32) -> (i32, i32, i32) {
    %c0_i32 = arith.constant 0 : i32
    %c0_i32_0 = arith.constant 0 : i32
    return %arg0, %c0_i32, %arg1 : i32, i32, i32
  }
  func.func @transform_3(%arg0: i32, %arg1: i32) -> (i32, i32, i32) {
    %c0_i32 = arith.constant 0 : i32
    %c0_i32_0 = arith.constant 0 : i32
    return %arg0, %c0_i32, %arg1 : i32, i32, i32
  }
}

</mosaic_0001>

<bundles_post_ra>
// kernel: tpu_custom_call.1
= control target key start
LH: loop header
LB: loop body
LE: loop exit
PB: predicated region body
PF: predicated region fallthrough
CT: control target
= control target key end

     0   :  { %s1127_s0 = inlined_call_operand.hbm [shape: f32[32,32], index: 0, kind: input, shape index: {}]   ;;  %s1128_s1 = inlined_call_operand.hbm [shape: s32[2,1,256], index: 1, kind: input, shape index: {}]   ;;  %s1129_s2 = inlined_call_operand.hbm [shape: f32[2,1,256], index: 2, kind: input, shape index: {}]   ;;  %s1130_s3 = inlined_call_operand.hbm [shape: f32[2,32,256], index: 3, kind: output, shape index: {}]  }
   0x1   :  { %1136 = sst [smem:[#allocation14_spill]] %s1128_s1 }
   0x2   :  { %8 = vsyncpa [#allocation3], 0 }
   0x3   :  { %9 = vsyncpa [#allocation6], 0 }
   0x4   :  { %11 = vsyncpa [#allocation6 + $0x1], 0 }
   0x5   :  { %12 = vsyncpa [#allocation4], 0 }
   0x6   :  { %14 = vsyncpa [#allocation4 + $0x1], 0  ;;  %s882_s12 = smov 0   ;;  %s884_s13 = smov 0  }
   0x7   :  { %s886_s14 = smov 0   ;;  %s888_s15 = smov 0  }
   0x8   :  { %s890_s16 = smov 0   ;;  %s892_s17 = smov 0  }
   0x9   :  { %s894_s18 = smov 0   ;;  %s896_s19 = smov 0  }
   0xa LB: > { %s29_s20 = sadd.s32 1, %s843_s17  ;;  %s32_s21 = sadd.s32 1, %s847_s18  ;;  %s851_s19 = sphi %s896_s19, %s20_s19   ;;  %s847_s18 = sphi %s894_s18, %s1160_s18   ;;  %s843_s17 = sphi %s892_s17, %s1159_s17   ;;  %s839_s16 = sphi %s890_s16, %s1158_s16   ;;  %s835_s15 = sphi %s888_s15, %s1157_s15   ;;  %s831_s14 = sphi %s886_s14, %s1156_s14   ;;  %s827_s13 = sphi %s884_s13, %s1155_s13   ;;  %s823_s12 = sphi %s882_s12, %s1154_s12  }
   0xb   : > { %p30_p0 = scmp.ge.s32.totalorder %s29_s20, 2  ;;  %p69_p1 = scmp.ne.s32.totalorder %s831_s14, %s827_s13 }
   0xc   : > { %p70_p2 = scmp.eq.s32.totalorder %s851_s19, 0  ;;  %s62_s23 = sadd.s32 1, %s831_s14 }
   0xd   : > { %s1162_s20 = smov (%p30_p0, %s29_s20), 0  ;;  %s1164_s21 = smov (!%p30_p0, %s32_s21), %s847_s18 }
   0xe   : > { %1137 = sst [smem:[#allocation12_spill]] %s1162_s20  ;;  %s58_s22 = ssub.s32 %s843_s17, %s1162_s20 }
   0xf   : > { %p34_p3 = scmp.ge.s32.totalorder %s1164_s21, 2  ;;  %p936_p4 = por %p70_p2, %p69_p1 }
  0x10   : > { %p596_p5 = scmp.lt.s32.totalorder %s851_s19, 4  ;;  %s168_s25 = sand.u32 1, %s851_s19  }
  0x11   : > { %s1166_s21 = smov (%p34_p3, %s1164_s21), 0  ;;  %s170_s26 = sand.u32 1, %s831_s14  }
  0x12   : > { %1139 = sst [smem:[#allocation13_spill]] %s1166_s21  ;;  %s57_s27 = ssub.s32 %s847_s18, %s1166_s21 }
  0x13   : > { %s59_s28 = sor.u32 %s58_s22, %s57_s27  ;;  %s518_s29 = sshll.u32 %s847_s18, 1 }
  0x14   : > { %p60_p6 = scmp.eq.s32.totalorder %s59_s28, 0  ;;  %s949_s30 = sadd.s32 %s843_s17, %s518_s29 }
  0x15   : > { %s519_s4 = sshll.u32 %s949_s30, 4  ;;  %s171_s5 = scalar_lea.vmem [#allocation5], %s170_s26 }
  0x16   : > { %s180_s6 = sshll.u32 %s171_s5, 4  ;;  %s1140_s1 = sld [smem:[#allocation14_spill]]  ;;  %s181_s6 = int_to_ptr.vmem [resolvable:$true] %s180_s6 }
  0x17   : > { %s955_s7 = scalar_select %p60_p6, %s831_s14, %s62_s23  }
  0x18   : > { %p966_p7 = pnand %p596_p5, %p936_p4  ;;  %s970_s22 = scalar_lea.sflag [#allocation6], %s168_s25 }
  0x19   : > { %s682_s23 = scalar_lea.vmem %s181_s6, 16  ;;  %s853_s27 = smov [#allocation5]  }
  0x1a   : > { %p671_p8 = pneg %p966_p7  ;;  %p683_p9 = scmp.ne.s32.totalorder %s181_s6, %s682_s23 }
  0x1b   : > { %s687_s28 = sshll.u32 %s853_s27, 4  ;;  %s688_s28 = int_to_ptr.vmem [resolvable:$false] %s687_s28 }
  0x1c   : > { %s178_s10 = scalar_lea.hbm %s1140_s1, %s519_s4  ;;  %p685_p10 = pnand %p683_p9, %p671_p8 }
  0x1d   : > { %s689_s24 = scalar_lea.vmem %s688_s28, 32  ;;  %p690_p12 = scmp.lt.s32.totalorder %s181_s6, %s688_s28 }
  0x1e   : > { %p686_p11 = pneg %p685_p10  ;;  %p691_p13 = scmp.lt.s32.totalorder %s689_s24, %s682_s23 }
  0x20   : > { %p692_p0 = por %p691_p13, %p690_p12 }
  0x22   : > { %p693_p2 = pnand %p692_p0, %p686_p11 }
  0x24   : > { %696 = shalt.err (!%p693_p2)
}
  0x25   : > { %587 = dma.hbm_to_vmem [thread:$0]  (!%p966_p7), %s178_s10, 16, %s181_s6, %s970_s22  }
  0x26   : > { %s981_s25 = sadd.s32 4294967295, %s851_s19   ;;  %s514_s29 = sadd.s32 4294967294, %s851_s19  }
  0x27   : > { %p75_p3 = scmp.ne.s32.totalorder %s827_s13, %s823_s12  ;;  %p1134_p4 = scmp.eq.s32.totalorder %s981_s25, 0 }
  0x28   : > { %p129_p5 = scmp.eq.s32.totalorder %s981_s25, 3  ;;  %p135_p6 = scmp.eq.s32.totalorder %s514_s29, 3 }
  0x29   : > { %p990_p9 = por %p1134_p4, %p75_p3  ;;  %p515_p10 = scmp.ge.s32.totalorder %s851_s19, 1 }
  0x2a   : > { %p998_p11 = por %p129_p5, %p69_p1  ;;  %p1002_p12 = por %p135_p6, %p75_p3 }
  0x2b   : > { %s1142_s5 = scalar_select %p990_p9, 1, 0 }
  0x2c   : > { %s1143_s6 = scalar_select %p998_p11, 1, 0 }
  0x2d   : > { %s1144_s8 = scalar_select %p1002_p12, 1, 0 }
  0x2e   : > { %p142_p13 = scmp.lt.s32.totalorder %s851_s19, 5  ;;  %s854_s10 = smov [#allocation2]  }
  0x2f   : > { %s154_s23 = sshll.u32 %s854_s10, 4  ;;  %s197_s24 = scalar_lea.hbm %s1129_s2, %s519_s4  ;;  %s1020_s23 = int_to_ptr.vmem [resolvable:$true] %s154_s23 }
  0x30   : > { %p1007_p0 = pnand %p515_p10, %p142_p13  ;;  %s190_s29 = scalar_lea.vmem [#allocation7], %s170_s26 }
  0x31   : > { %s199_s1 = sshll.u32 %s190_s29, 4  ;;  %s855_s30 = smov [#allocation7]   ;;  %s200_s1 = int_to_ptr.vmem [resolvable:$true] %s199_s1 }
  0x32   : > { %p580_p1 = pneg %p1007_p0  ;;  %s710_s20 = scalar_lea.vmem %s200_s1, 16 }
  0x33   : > { %p711_p3 = scmp.ne.s32.totalorder %s200_s1, %s710_s20  ;;  %s715_s4 = sshll.u32 %s855_s30, 4  ;;  %s716_s4 = int_to_ptr.vmem [resolvable:$false] %s715_s4 }
  0x34   : > { %p1024_p2 = pnand %p580_p1, %p1134_p4  ;;  %s717_s10 = scalar_lea.vmem %s716_s4, 32 }
  0x35   : > { %p713_p5 = pnand %p711_p3, %p671_p8  ;;  %p718_p10 = scmp.lt.s32.totalorder %s200_s1, %s716_s4 }
  0x36   : > { %p719_p13 = scmp.lt.s32.totalorder %s717_s10, %s710_s20 }
  0x37   : > { %p714_p6 = pneg %p713_p5 }
  0x38   : > { %p720_p12 = por %p719_p13, %p718_p10 }
  0x3a   : > { %p721_p11 = pnand %p720_p12, %p714_p6 }
  0x3c   : > { %724 = shalt.err (!%p721_p11)
}
  0x3d   : > { %590 = dma.hbm_to_vmem [thread:$0]  (!%p966_p7), %s197_s24, 16, %s200_s1, %s970_s22  }
  0x3e   : > { %p727_p8 = pneg %p1024_p2  ;;  %s736_s26 = scalar_lea.vmem %s1020_s23, 512 }
  0x3f   : > { %p737_p1 = scmp.ne.s32.totalorder %s1020_s23, %s736_s26  ;;  %p744_p4 = scmp.lt.s32.totalorder %s1020_s23, %s1020_s23 }
  0x40   : > { %p745_p9 = scmp.lt.s32.totalorder %s736_s26, %s736_s26 }
  0x41   : > { %p739_p3 = pnand %p737_p1, %p727_p8 }
  0x42   : > { %p746_p10 = por %p745_p9, %p744_p4 }
  0x43   : > { %p740_p5 = pneg %p739_p3 }
  0x45   : > { %p747_p12 = pnand %p746_p10, %p740_p5 }
  0x47   : > { %750 = shalt.err (!%p747_p12)
}
  0x48   : > { %s856_s20 = smov 128   ;;  %s857_s11 = smov 8  }
  0x49   : > { %583 = dma.hbm_to_vmem [thread:$0]  (!%p1024_p2), %s1127_s0, 512, %s1020_s23, [#allocation3], %s856_s20, %s856_s20, %s857_s11  }
  0x4a   : > { %208 = sbr.rel (%p1007_p0) target bundleno = 310 (0x136), region = 32  ;;  %p1147_p7 = scmp.eq.s32.totalorder (!%p1007_p0), %s981_s25, 0 }
  0x4f   : > { %810 = dma.done.wait (%p1147_p7), [#allocation3], 512   ;;  %p1148_p11 = pmov %p1147_p7 }
  0x50   : > { %s214_s1 = sand.u32 1, %s981_s25   ;;  %s1054_s22 = sand.u32 1, %s827_s13  }
  0x51   : > { %812 = vsyncadd (%p1148_p11), [#allocation3], 4294966784  ;;  %s215_s21 = scalar_lea.sflag [#allocation6], %s214_s1  ;;  %s217_s24 = scalar_lea.vmem [#allocation5], %s1054_s22 }
  0x52   : > { %p1149_p4 = scmp.ne.s32.totalorder %s1142_s5, 0 }
  0x54   : > { %814 = dma.done.wait (%p1149_p4), %s215_s21, 32  }
  0x55   : > { %816 = vsyncadd (%p1149_p4), %s215_s21, 4294967264  ;;  %v251_v0 = vlaneseq  ;;  %vm280_vm0 = vcmask 261120   ;;  %v525_v5 = vld [vmem:[%s217_s24] ss:$0 sm:$0xff]  ;;  %s225_s9 = scalar_lea.vmem [#allocation7], %s1054_s22  ;;  %v278_v8 = vld [vmem:[#allocation2 + $0x10] sm:$0xff] }
  0x56   : > { %v526_v6 = vld [vmem:[%s225_s9] ss:$0 sm:$0xff]  ;;  %v277_v9 = vld [vmem:[#allocation2 + $0x8] sm:$0xff]  ;;  %v279_v10 = vld [vmem:[#allocation2 + $0x18] sm:$0xff]  ;;  %559 = vmatprep.mubr.msk.f32.mxu1 %vm280_vm0, %v278_v8  ;;  %s524_s25 = sshll.u32 %s1054_s22, 5  ;;  %s536_s5 = sshll.u32 %s839_s16, 3 }
  0x57   : > { %v252_v1 = vshrl.u32 %v251_v0, 7  ;;  %v276_v7 = vld [vmem:[#allocation2] sm:$0xff]  ;;  %s394_s23 = sadd.s32 %s835_s15, %s536_s5  ;;  %s250_s29 = scalar_lea.vmem [#allocation8], %s524_s25 }
  0x58   : > { %556 = vmatprep.mubr.msk.f32.mxu0 %vm280_vm0, %v276_v7  ;;  %s397_s30 = sshll.u32 %s250_s29, 4  ;;  %s537_s4 = sshll.u32 %s394_s23, 7  ;;  %s1069_s30 = int_to_ptr.vmem [resolvable:$true] %s397_s30 }
  0x59   : > { %v255_v2 = vadd.s32 24, %v252_v1  ;;  %v254_v3 = vadd.s32 16, %v252_v1  ;;  %v253_v4 = vadd.s32 8, %v252_v1  ;;  %vm262_vm4 = vcmp.eq.s32.totalorder %v252_v1, %v525_v5  ;;  %s1074_s20 = scalar_lea.hbm %s1130_s3, %s537_s4  ;;  %s383_s15 = scalar_lea.sflag [#allocation4], %s1054_s22 }
  0x5a   : > { %s751_s16 = scalar_lea.vmem %s1069_s30, 512  ;;  %p1150_p0 = scmp.ne.s32.totalorder %s1143_s6, 0 }
  0x5b   : > { %vm265_vm1 = vcmp.eq.s32.totalorder %v255_v2, %v525_v5  ;;  %vm264_vm2 = vcmp.eq.s32.totalorder %v254_v3, %v525_v5  ;;  %vm263_vm3 = vcmp.eq.s32.totalorder %v253_v4, %v525_v5  ;;  %p752_p9 = scmp.ne.s32.totalorder %s1069_s30, %s751_s16  ;;  %s858_s11 = smov [#allocation8]  }
  0x5c   : > { %548 = vmatprep.subr.msk.mxu0 %vm265_vm1, %v526_v6  ;;  %562 = vmatprep.subr.msk.mxu1 %vm265_vm1, %v526_v6  ;;  %s755_s27 = sshll.u32 %s858_s11, 4  ;;  %s756_s27 = int_to_ptr.vmem [resolvable:$false] %s755_s27 }
  0x5d   : > { %549 = vmatpush3.msk.msra.mxu0 %vm265_vm1, %v526_v6  ;;  %566 = vmatpush3.msk.msra.mxu1 %vm265_vm1, %v526_v6  ;;  %p753_p2 = pnand %p752_p9, %p1150_p0  ;;  %s757_s28 = scalar_lea.vmem %s756_s27, 1024 }
  0x5e   : > { %550 = vmatprep.subr.msk.mxu0 %vm264_vm2, %v526_v6  ;;  %563 = vmatprep.subr.msk.mxu1 %vm264_vm2, %v526_v6  ;;  %p758_p13 = scmp.lt.s32.totalorder %s1069_s30, %s756_s27  ;;  %p759_p8 = scmp.lt.s32.totalorder %s757_s28, %s751_s16 }
  0x5f   : > { %551 = vmatpush3.msk.msra.mxu0 %vm264_vm2, %v526_v6  ;;  %567 = vmatpush3.msk.msra.mxu1 %vm264_vm2, %v526_v6  ;;  %p754_p6 = pneg %p753_p2 }
  0x60   : > { %552 = vmatprep.subr.msk.mxu0 %vm263_vm3, %v526_v6  ;;  %564 = vmatprep.subr.msk.mxu1 %vm263_vm3, %v526_v6  ;;  %p760_p1 = por %p759_p8, %p758_p13 }
  0x61   : > { %553 = vmatpush3.msk.msra.mxu0 %vm263_vm3, %v526_v6  ;;  %568 = vmatpush3.msk.msra.mxu1 %vm263_vm3, %v526_v6 }
  0x62   : > { %554 = vmatprep.subr.msk.mxu0 %vm262_vm4, %v526_v6  ;;  %565 = vmatprep.subr.msk.mxu1 %vm262_vm4, %v526_v6  ;;  %p761_p3 = pnand %p760_p1, %p754_p6 }
  0x63   : > { %555 = vmatpush3.msk.msra.mxu0 %vm262_vm4, %v526_v6  ;;  %569 = vmatpush3.msk.msra.mxu1 %vm262_vm4, %v526_v6 }
  0x64   : > { %557 = vmatmul.mubr.msk.f32.vlgmr.msra.gmra.mxu0 %vm280_vm0, %v277_v9  ;;  %560 = vmatmul.mubr.msk.f32.vlgmr.msra.gmra.mxu1 %vm280_vm0, %v279_v10 }
 0x124   : > { %v558_v11 = vpop.f32.mrf.mxu0  ;;  %v561_v12 = vpop.f32.mrf.mxu1 }
 0x125   : > { %379 = vst [vmem:[%s250_s29 + $0x8] sm:$0xff] %v558_v11  ;;  %381 = vst [vmem:[%s250_s29 + $0x18] sm:$0xff] %v561_v12 }
 0x126   : > { %v359_v13 = vpop.f32.mrf.mxu0  ;;  %v369_v14 = vpop.f32.mrf.mxu1 }
 0x127   : > { %378 = vst [vmem:[%s250_s29] sm:$0xff] %v359_v13  ;;  %380 = vst [vmem:[%s250_s29 + $0x10] sm:$0xff] %v369_v14 }
 0x128   : > { %764 = shalt.err (!%p761_p3)
}
 0x129   : > { %s765_s1 = scalar_lea.hbm %s1074_s20, 512  ;;  %s769_s9 = scalar_lea.hbm %s1130_s3, 2048 }
 0x12a   : > { %p766_p5 = scmp.ne.s32.totalorder %s1074_s20, %s765_s1  ;;  %p770_p7 = scmp.lt.s32.totalorder %s1074_s20, %s1130_s3 }
 0x12b   : > { %p771_p11 = scmp.lt.s32.totalorder %s769_s9, %s765_s1 }
 0x12c   : > { %p767_p10 = pnand %p766_p5, %p1150_p0 }
 0x12d   : > { %p772_p4 = por %p771_p11, %p770_p7 }
 0x12e   : > { %p768_p12 = pneg %p767_p10 }
 0x130   : > { %p773_p9 = pnand %p772_p4, %p768_p12 }
 0x132   : > { %776 = shalt.err (!%p773_p9)
}
 0x133   : > { %s859_s23 = smov 128   ;;  %s860_s29 = smov 256  }
 0x134   : > { %s861_s4 = smov 8  }
 0x135   : > { %578 = dma.vmem_to_hbm [thread:$0]  (%p1150_p0), %s1069_s30, 512, %s1074_s20, %s383_s15, %s859_s23, %s860_s29, %s861_s4  }
 0x136 PF: > { %p598_p2 = scmp.ge.s32.totalorder %s851_s19, 2  ;;  %s412_s10 = sand.u32 1, %s823_s12  }
 0x137   : > { %p1151_p6 = scmp.ne.s32.totalorder %s1144_s8, 0  ;;  %s413_s26 = scalar_lea.sflag [#allocation4], %s412_s10 }
 0x139   : > { %p592_p13 = pnand %p598_p2, %p1151_p6 }
 0x13b   : > { %p593_p8 = pneg %p592_p13 }
 0x13d   : > { %818 = dma.done.wait (%p593_p8), %s413_s26, 512  }
 0x13e   : > { %820 = vsyncadd (%p593_p8), %s413_s26, 4294966784  ;;  %s20_s19 = sadd.s32 1, %s851_s19   ;;  %s1152_s6 = sld [smem:[#allocation12_spill]] }
 0x13f   : > { %p17_p1 = scmp.ge.s32.totalorder %s20_s19, 6   ;;  %s1153_s22 = sld [smem:[#allocation13_spill]] }
 0x140   : > { %s1154_s12 = smov %s827_s13  ;;  %s1155_s13 = smov %s831_s14 }
 0x141   : > { %s1156_s14 = smov %s955_s7  ;;  %s1157_s15 = smov %s843_s17 }
 0x142   : > { %s1158_s16 = smov %s847_s18  ;;  %19 = sbr.rel (!%p17_p1) target bundleno = 10 (0xa), region = 93 }
 0x144   : > { %s1159_s17 = smov %s1152_s6 }
 0x145   : > { %s1160_s18 = smov %s1153_s22 }
 0x147   :  { %418 = vsyncpa [#allocation3], 1 }
 0x148   :  { %420 = vsyncpa [#allocation3 + $0x1], 1 }
 0x149   :  { %421 = vsyncpa [#allocation6], 1 }
 0x14a   :  { %423 = vsyncpa [#allocation6 + $0x1], 1 }
 0x14b   :  { %424 = vsyncpa [#allocation4], 1 }
 0x14c   :  { %426 = vsyncpa [#allocation4 + $0x1], 1 }

</bundles_post_ra>
